<compile_context>
chip_gen: v5e
topology: v5e:2x2
jax: 0.10.0
libtpu: 0.0.40
codegen_flags: <defaults>
</compile_context>

<pallas_src>
import jax
import jax.numpy as jnp
from jax import lax
from jax.experimental import pallas as pl
from jax.experimental.pallas import tpu as pltpu


def _value_mlp_kernel(x_ref, w1_ref, b1_ref, w2_ref, b2_ref, w3_ref, b3_ref,
                      w4_ref, b4_ref, o_ref):
    """Fused 4-layer value MLP.

    x_ref  : (tb, S)   batch-major input tile (contiguous HBM source)
    w1_ref : (H, S)    PyTorch-layout weight
    w2_ref : (H, H)
    w3_ref : (H, H)
    w4_ref : (H, 1)    f32 column for the final VPU/XLU reduction
    b1..b3 : (H, 1)    biases in the activation dtype
    b4_ref : (1, 1)    f32
    o_ref  : (1, tb)   lane-dense value row for this batch tile
    """
    act_dt = b1_ref.dtype
    x = x_ref[...]                                              # (tb, S)

    # Layer 1: contract x's feature axis directly (w1 @ x^T on the MXU, no
    # explicit transpose) -> feature-major (H, tb), batch on the lane axis.
    h = lax.dot_general(w1_ref[...], x,
                        dimension_numbers=(((1,), (1,)), ((), ())),
                        preferred_element_type=jnp.float32)     # (H, tb) f32
    h = jnp.maximum(h.astype(act_dt) + b1_ref[...], 0)          # bias+ReLU (VPU)

    # Layer 2: (H, H) @ (H, tb) -> (H, tb), f32 accumulation.
    h = jnp.dot(w2_ref[...], h, preferred_element_type=jnp.float32)
    h = jnp.maximum(h.astype(act_dt) + b2_ref[...], 0)

    # Layer 3: (H, H) @ (H, tb) -> (H, tb)
    h = jnp.dot(w3_ref[...], h, preferred_element_type=jnp.float32)
    h = jnp.maximum(h.astype(act_dt) + b3_ref[...], 0)

    # Layer 4 (64 -> 1): VPU multiply + cross-sublane (XLU) reduce in f32.
    v = jnp.sum(h.astype(jnp.float32) * w4_ref[...], axis=0, keepdims=True)
    o_ref[...] = (v + b4_ref[...]).astype(o_ref.dtype)          # (1, tb)


def _round_up(x, m):
    return (x + m - 1) // m * m


_MAX_TILE = 2048  # rows per grid step cap (a few MB of VMEM per step)


def continuous_v_forward(s, params, *, batch_tile=None,
                         compute_dtype=jnp.float32):
    """Run the ContinuousV forward pass with a single fused Pallas kernel.

    Args:
      s: (B, S) float32 batch of states.
      params: PyTorch-layout parameters:
              w1 (64, S), w2 (64, 64), w3 (64, 64), w4 (1, 64),
              b1/b2/b3 (64,), b4 (1,).
      batch_tile: rows per grid step; must be a multiple of 128. Default
                  policy picks tiles up to 2048 rows and, for B > 128, an
                  even grid of >= 2 steps (v7x megacore sharding).
      compute_dtype: dtype of the matmul operands and of the bias/ReLU
                     epilogue (f32 default; bf16 recommended only on
                     v6e/v7x). MXU accumulation and the final reduction
                     always stay f32.
    Returns:
      (B, 1) float32 value estimates.
    """
    B, S = s.shape
    H = params["w1"].shape[0]
    cdt = jnp.dtype(compute_dtype)

    if batch_tile is None:
        b128 = _round_up(B, 128)
        if b128 <= 128:
            tb = 128                                  # single step; nothing to shard
        else:
            # Even number of steps (v7x has 2 TCs), each step <= _MAX_TILE rows.
            n_steps = 2 * pl.cdiv(b128, 2 * _MAX_TILE)
            tb = _round_up(pl.cdiv(b128, n_steps), 128)
    else:
        tb = int(batch_tile)
    assert tb > 0 and tb % 128 == 0, "batch_tile must be a positive multiple of 128"

    B_pad = _round_up(B, tb)
    grid = B_pad // tb

    # Batch-major input goes straight to the kernel (contiguous HBM tiles).
    x = s
    if x.dtype != cdt:
        x = x.astype(cdt)
    if B_pad != B:
        x = jnp.pad(x, ((0, B_pad - B), (0, 0)))

    w1 = params["w1"].astype(cdt)                               # (H, S)
    w2 = params["w2"].astype(cdt)                               # (H, H)
    w3 = params["w3"].astype(cdt)                               # (H, H)
    w4 = params["w4"].reshape(-1, 1).astype(jnp.float32)        # (H, 1) f32 column
    b1 = params["b1"].reshape(-1, 1).astype(cdt)                # (H, 1)
    b2 = params["b2"].reshape(-1, 1).astype(cdt)
    b3 = params["b3"].reshape(-1, 1).astype(cdt)
    b4 = params["b4"].reshape(1, 1).astype(jnp.float32)         # (1, 1)

    # Weights/biases are tiny -> full tensors, grid-invariant block index, so
    # Pallas fetches them once and never refetches.
    full = lambda arr: pl.BlockSpec(arr.shape, lambda i: (0, 0))

    grid_spec = pltpu.PrefetchScalarGridSpec(
        num_scalar_prefetch=0,
        grid=(grid,),
        in_specs=[
            pl.BlockSpec((tb, S), lambda i: (i, 0)),            # batch-major x tile
            full(w1), full(b1),
            full(w2), full(b2),
            full(w3), full(b3),
            full(w4), full(b4),
        ],
        # Lane-dense 2-D output slab: one (1, tb) row per grid step.
        out_specs=pl.BlockSpec((1, tb), lambda i: (0, i)),
    )

    itemsize = cdt.itemsize
    weight_bytes = ((H * S + 2 * H * H) * itemsize          # w1..w3
                    + 3 * H * itemsize                       # b1..b3
                    + (H + 1) * 4)                           # w4, b4 (f32)
    cost = pl.CostEstimate(
        flops=2 * B_pad * (S * H + 2 * H * H + H),
        transcendentals=0,
        bytes_accessed=B_pad * S * itemsize + B_pad * 4 + weight_bytes,
    )

    out = pl.pallas_call(
        _value_mlp_kernel,
        out_shape=jax.ShapeDtypeStruct((1, B_pad), jnp.float32),
        grid_spec=grid_spec,
        compiler_params=pltpu.CompilerParams(
            dimension_semantics=("parallel",)),                 # megacore / pipeline
        cost_estimate=cost,
    )(x, w1, b1, w2, b2, w3, b3, w4, b4)

    return out[0, :B].reshape(B, 1)


def init_params(key, S, hidden=64):
    """PyTorch nn.Linear default init, PyTorch (out, in) weight layout."""
    dims = [(hidden, S), (hidden, hidden), (hidden, hidden), (1, hidden)]
    params = {}
    keys = jax.random.split(key, 2 * len(dims))
    for idx, (fan_out, fan_in) in enumerate(dims):
        bound = 1.0 / float(fan_in) ** 0.5
        wk, bk = keys[2 * idx], keys[2 * idx + 1]
        params[f"w{idx + 1}"] = jax.random.uniform(
            wk, (fan_out, fan_in), jnp.float32, minval=-bound, maxval=bound)
        params[f"b{idx + 1}"] = jax.random.uniform(
            bk, (fan_out,), jnp.float32, minval=-bound, maxval=bound)
    return params


def reference_forward(s, params):
    """Plain-JAX reference identical to the PyTorch module semantics."""
    h = jnp.maximum(s @ params["w1"].T + params["b1"], 0.0)
    h = jnp.maximum(h @ params["w2"].T + params["b2"], 0.0)
    h = jnp.maximum(h @ params["w3"].T + params["b3"], 0.0)
    return h @ params["w4"].T + params["b4"]


if __name__ == "__main__":
    key = jax.random.PRNGKey(0)
    k_param, k_x = jax.random.split(key)

    B, S = 8, 8  # small state dim + batch, consistent with ContinuousV(S)
    params = init_params(k_param, S)
    s = jax.random.normal(k_x, (B, S), jnp.float32)
    ref = reference_forward(s, params)

    # f32 path (single grid step at this tiny batch, padded to 128 rows).
    out = jax.block_until_ready(continuous_v_forward(s, params))
    assert out.shape == (B, 1), out.shape
    assert jnp.allclose(out, ref, atol=1e-3, rtol=1e-3), (
        f"f32 max abs err {jnp.max(jnp.abs(out - ref))}")

    # Ragged batch, default tile policy: tb=256 -> even 2-step parallel grid.
    B2 = 300
    s2 = jax.random.normal(jax.random.PRNGKey(1), (B2, S), jnp.float32)
    ref2 = reference_forward(s2, params)
    out2 = jax.block_until_ready(continuous_v_forward(s2, params))
    assert out2.shape == (B2, 1), out2.shape
    assert jnp.allclose(out2, ref2, atol=1e-3, rtol=1e-3), (
        f"default-tile max abs err {jnp.max(jnp.abs(out2 - ref2))}")

    # Explicit small tile: 3-step grid with a padded tail block.
    out3 = jax.block_until_ready(
        continuous_v_forward(s2, params, batch_tile=128))
    assert out3.shape == (B2, 1), out3.shape
    assert jnp.allclose(out3, ref2, atol=1e-3, rtol=1e-3), (
        f"tiled max abs err {jnp.max(jnp.abs(out3 - ref2))}")

    # bf16 operands + bf16 bias/ReLU epilogue, f32 accumulation (v6e/v7x path).
    out_bf16 = jax.block_until_ready(
        continuous_v_forward(s, params, compute_dtype=jnp.bfloat16))
    assert out_bf16.shape == (B, 1), out_bf16.shape
    assert jnp.allclose(out_bf16, ref, atol=1e-1, rtol=1e-1), (
        f"bf16 max abs err {jnp.max(jnp.abs(out_bf16 - ref))}")

    print("KERNEL_OK")
</pallas_src>

<mosaic_0001>
module attributes {stable_mosaic.version = 11 : i64} {
  func.func @_value_mlp_kernel(%arg0: i32, %arg1: memref<128x8xf32, #tpu.memory_space<vmem>>, %arg2: memref<64x8xf32, #tpu.memory_space<vmem>>, %arg3: memref<64x1xf32, #tpu.memory_space<vmem>>, %arg4: memref<64x64xf32, #tpu.memory_space<vmem>>, %arg5: memref<64x1xf32, #tpu.memory_space<vmem>>, %arg6: memref<64x64xf32, #tpu.memory_space<vmem>>, %arg7: memref<64x1xf32, #tpu.memory_space<vmem>>, %arg8: memref<64x1xf32, #tpu.memory_space<vmem>>, %arg9: memref<1x1xf32, #tpu.memory_space<vmem>>, %arg10: memref<1x128xf32, #tpu.memory_space<vmem>>) attributes {dimension_semantics = [#tpu.dimension_semantics<parallel>], iteration_bounds = array<i64: 1>, scalar_prefetch = 0 : i64, scratch_operands = 0 : i64, tpu.core_type = #tpu.core_type<tc>, window_params = [{transform_indices = @transform_0, window_bounds = array<i64: 128, 8>}, {pipeline_mode = #tpu.pipeline_mode<synchronous>, transform_indices = @transform_1, window_bounds = array<i64: 64, 8>}, {pipeline_mode = #tpu.pipeline_mode<synchronous>, transform_indices = @transform_2, window_bounds = array<i64: 64, 1>}, {pipeline_mode = #tpu.pipeline_mode<synchronous>, transform_indices = @transform_3, window_bounds = array<i64: 64, 64>}, {pipeline_mode = #tpu.pipeline_mode<synchronous>, transform_indices = @transform_4, window_bounds = array<i64: 64, 1>}, {pipeline_mode = #tpu.pipeline_mode<synchronous>, transform_indices = @transform_5, window_bounds = array<i64: 64, 64>}, {pipeline_mode = #tpu.pipeline_mode<synchronous>, transform_indices = @transform_6, window_bounds = array<i64: 64, 1>}, {pipeline_mode = #tpu.pipeline_mode<synchronous>, transform_indices = @transform_7, window_bounds = array<i64: 64, 1>}, {pipeline_mode = #tpu.pipeline_mode<synchronous>, transform_indices = @transform_8, window_bounds = array<i64: 1, 1>}, {transform_indices = @transform_9, window_bounds = array<i64: 1, 128>}]} {
    %c0 = arith.constant 0 : index
    %c0_0 = arith.constant 0 : index
    %0 = vector.load %arg1[%c0, %c0_0] : memref<128x8xf32, #tpu.memory_space<vmem>>, vector<128x8xf32>
    %c0_1 = arith.constant 0 : index
    %c0_2 = arith.constant 0 : index
    %1 = vector.load %arg2[%c0_1, %c0_2] : memref<64x8xf32, #tpu.memory_space<vmem>>, vector<64x8xf32>
    %cst = arith.constant dense<0.000000e+00> : vector<64x128xf32>
    %2 = tpu.matmul %1, %0, %cst {dimension_numbers = #tpu.dot_dimension_numbers<[1], [1], [0], [0], [0, 0, 1, 0], [], []>} : vector<64x8xf32>, vector<128x8xf32>, vector<64x128xf32> -> vector<64x128xf32>
    %c0_3 = arith.constant 0 : index
    %c0_4 = arith.constant 0 : index
    %3 = vector.load %arg3[%c0_3, %c0_4] : memref<64x1xf32, #tpu.memory_space<vmem>>, vector<64x1xf32>
    %4 = vector.broadcast %3 : vector<64x1xf32> to vector<64x128xf32>
    %5 = arith.addf %2, %4 : vector<64x128xf32>
    %cst_5 = arith.constant 0.000000e+00 : f32
    %6 = vector.broadcast %cst_5 : f32 to vector<64x128xf32>
    %7 = arith.maximumf %5, %6 : vector<64x128xf32>
    %c0_6 = arith.constant 0 : index
    %c0_7 = arith.constant 0 : index
    %8 = vector.load %arg4[%c0_6, %c0_7] : memref<64x64xf32, #tpu.memory_space<vmem>>, vector<64x64xf32>
    %cst_8 = arith.constant dense<0.000000e+00> : vector<64x128xf32>
    %9 = tpu.matmul %8, %7, %cst_8 {dimension_numbers = #tpu.dot_dimension_numbers<[1], [0], [0], [1], [0, 0, 1, 1], [], []>} : vector<64x64xf32>, vector<64x128xf32>, vector<64x128xf32> -> vector<64x128xf32>
    %c0_9 = arith.constant 0 : index
    %c0_10 = arith.constant 0 : index
    %10 = vector.load %arg5[%c0_9, %c0_10] : memref<64x1xf32, #tpu.memory_space<vmem>>, vector<64x1xf32>
    %11 = vector.broadcast %10 : vector<64x1xf32> to vector<64x128xf32>
    %12 = arith.addf %9, %11 : vector<64x128xf32>
    %cst_11 = arith.constant 0.000000e+00 : f32
    %13 = vector.broadcast %cst_11 : f32 to vector<64x128xf32>
    %14 = arith.maximumf %12, %13 : vector<64x128xf32>
    %c0_12 = arith.constant 0 : index
    %c0_13 = arith.constant 0 : index
    %15 = vector.load %arg6[%c0_12, %c0_13] : memref<64x64xf32, #tpu.memory_space<vmem>>, vector<64x64xf32>
    %cst_14 = arith.constant dense<0.000000e+00> : vector<64x128xf32>
    %16 = tpu.matmul %15, %14, %cst_14 {dimension_numbers = #tpu.dot_dimension_numbers<[1], [0], [0], [1], [0, 0, 1, 1], [], []>} : vector<64x64xf32>, vector<64x128xf32>, vector<64x128xf32> -> vector<64x128xf32>
    %c0_15 = arith.constant 0 : index
    %c0_16 = arith.constant 0 : index
    %17 = vector.load %arg7[%c0_15, %c0_16] : memref<64x1xf32, #tpu.memory_space<vmem>>, vector<64x1xf32>
    %18 = vector.broadcast %17 : vector<64x1xf32> to vector<64x128xf32>
    %19 = arith.addf %16, %18 : vector<64x128xf32>
    %cst_17 = arith.constant 0.000000e+00 : f32
    %20 = vector.broadcast %cst_17 : f32 to vector<64x128xf32>
    %21 = arith.maximumf %19, %20 : vector<64x128xf32>
    %c0_18 = arith.constant 0 : index
    %c0_19 = arith.constant 0 : index
    %22 = vector.load %arg8[%c0_18, %c0_19] : memref<64x1xf32, #tpu.memory_space<vmem>>, vector<64x1xf32>
    %23 = vector.broadcast %22 : vector<64x1xf32> to vector<64x128xf32>
    %24 = arith.mulf %21, %23 : vector<64x128xf32>
    %cst_20 = arith.constant dense<0.000000e+00> : vector<128xf32>
    %25 = vector.multi_reduction <add>, %24, %cst_20 [0] : vector<64x128xf32> to vector<128xf32>
    %26 = vector.shape_cast %25 : vector<128xf32> to vector<1x128xf32>
    %c0_21 = arith.constant 0 : index
    %c0_22 = arith.constant 0 : index
    %27 = vector.load %arg9[%c0_21, %c0_22] : memref<1x1xf32, #tpu.memory_space<vmem>>, vector<1x1xf32>
    %28 = vector.broadcast %27 : vector<1x1xf32> to vector<1x128xf32>
    %29 = arith.addf %26, %28 : vector<1x128xf32>
    %c0_23 = arith.constant 0 : index
    %c0_24 = arith.constant 0 : index
    %30 = vector.load %arg10[%c0_23, %c0_24] : memref<1x128xf32, #tpu.memory_space<vmem>>, vector<1x128xf32>
    tpu.vector_store %arg10[%c0_23, %c0_24], %29 {strides = array<i32>} : memref<1x128xf32, #tpu.memory_space<vmem>>, vector<1x128xf32>,
    return
  }
  func.func @transform_0(%arg0: i32) -> (i32, i32) {
    %c0_i32 = arith.constant 0 : i32
    %c0_i32_0 = arith.constant 0 : i32
    return %arg0, %c0_i32 : i32, i32
  }
  func.func @transform_1(%arg0: i32) -> (i32, i32) {
    %c0_i32 = arith.constant 0 : i32
    %c0_i32_0 = arith.constant 0 : i32
    %c0_i32_1 = arith.constant 0 : i32
    return %c0_i32, %c0_i32_0 : i32, i32
  }
  func.func @transform_2(%arg0: i32) -> (i32, i32) {
    %c0_i32 = arith.constant 0 : i32
    %c0_i32_0 = arith.constant 0 : i32
    %c0_i32_1 = arith.constant 0 : i32
    return %c0_i32, %c0_i32_0 : i32, i32
  }
  func.func @transform_3(%arg0: i32) -> (i32, i32) {
    %c0_i32 = arith.constant 0 : i32
    %c0_i32_0 = arith.constant 0 : i32
    %c0_i32_1 = arith.constant 0 : i32
    return %c0_i32, %c0_i32_0 : i32, i32
  }
  func.func @transform_4(%arg0: i32) -> (i32, i32) {
    %c0_i32 = arith.constant 0 : i32
    %c0_i32_0 = arith.constant 0 : i32
    %c0_i32_1 = arith.constant 0 : i32
    return %c0_i32, %c0_i32_0 : i32, i32
  }
  func.func @transform_5(%arg0: i32) -> (i32, i32) {
    %c0_i32 = arith.constant 0 : i32
    %c0_i32_0 = arith.constant 0 : i32
    %c0_i32_1 = arith.constant 0 : i32
    return %c0_i32, %c0_i32_0 : i32, i32
  }
  func.func @transform_6(%arg0: i32) -> (i32, i32) {
    %c0_i32 = arith.constant 0 : i32
    %c0_i32_0 = arith.constant 0 : i32
    %c0_i32_1 = arith.constant 0 : i32
    return %c0_i32, %c0_i32_0 : i32, i32
  }
  func.func @transform_7(%arg0: i32) -> (i32, i32) {
    %c0_i32 = arith.constant 0 : i32
    %c0_i32_0 = arith.constant 0 : i32
    %c0_i32_1 = arith.constant 0 : i32
    return %c0_i32, %c0_i32_0 : i32, i32
  }
  func.func @transform_8(%arg0: i32) -> (i32, i32) {
    %c0_i32 = arith.constant 0 : i32
    %c0_i32_0 = arith.constant 0 : i32
    %c0_i32_1 = arith.constant 0 : i32
    return %c0_i32, %c0_i32_0 : i32, i32
  }
  func.func @transform_9(%arg0: i32) -> (i32, i32) {
    %c0_i32 = arith.constant 0 : i32
    %c0_i32_0 = arith.constant 0 : i32
    return %c0_i32, %arg0 : i32, i32
  }
}

</mosaic_0001>

<bundles_post_ra>
// kernel: tpu_custom_call.1
= control target key start
LH: loop header
LB: loop body
LE: loop exit
PB: predicated region body
PF: predicated region fallthrough
CT: control target
= control target key end

     0   :  { %s999_s0 = inlined_call_operand.vmem [shape: f32[128,8], index: 0, kind: input, shape index: {}]   ;;  %s1000_s1 = inlined_call_operand.vmem [shape: f32[64,8], index: 1, kind: input, shape index: {}]   ;;  %s1001_s2 = inlined_call_operand.vmem [shape: f32[64,1], index: 2, kind: input, shape index: {}]   ;;  %s1002_s3 = inlined_call_operand.vmem [shape: f32[64,64], index: 3, kind: input, shape index: {}]   ;;  %s1003_s4 = inlined_call_operand.vmem [shape: f32[64,1], index: 4, kind: input, shape index: {}]   ;;  %s1004_s5 = inlined_call_operand.vmem [shape: f32[64,64], index: 5, kind: input, shape index: {}]   ;;  %s1005_s6 = inlined_call_operand.vmem [shape: f32[64,1], index: 6, kind: input, shape index: {}]   ;;  %s1006_s7 = inlined_call_operand.vmem [shape: f32[64,1], index: 7, kind: input, shape index: {}]   ;;  %s1007_s8 = inlined_call_operand.<no memory space> [shape: f32[1,1], index: 8, kind: input, shape index: {}]   ;;  %s1008_s9 = inlined_call_operand.hbm [shape: f32[1,128], index: 9, kind: output, shape index: {}]  }
   0x1   :  { %v14_v0 = vstv %s1007_s8 }
   0x2   :  { %15 = vst [vmem:[#allocation2] sm:$0x1] %v14_v0 }
   0x3   :  { %v50_v1 = vld [vmem:[%s999_s0 + $0x78] sm:$0xff]  ;;  %vm107_vm0 = vcmask 64512   ;;  %v49_v2 = vld [vmem:[%s999_s0 + $0x70] sm:$0xff]  ;;  %v669_v3 = vmov 0   ;;  %v64_v5 = vld [vmem:[%s1001_s2 + $0x28] sm:$0xff] }
   0x4   :  { %622 = vmatpush.xpose.msk.msra.mxu3 %vm107_vm0, %v50_v1  ;;  %582 = vmatpush.xpose.msk.msra.mxu0 %vm107_vm0, %v50_v1  ;;  %v66_v4 = vld [vmem:[%s1001_s2 + $0x38] sm:$0xff] }
   0x5   :  { %640 = vset.pattern.permute.xlu0 %v669_v3  ;;  %641 = vset.pattern.permute.xlu1 %v669_v3 }
   0x6   :  { %104 = vperm.xlu0 %640, %v66_v4   ;;  %642 = vset.pattern.permute.xlu2 %v669_v3 }
   0x7   :  { %94 = vperm.xlu1 %641, %v64_v5  }
   0x8   :  { %16 = vsyncpa [#allocation4], 0  ;;  %623 = vmatpush.xpose.msk.msra.mxu3 %vm107_vm0, %v49_v2  ;;  %583 = vmatpush.xpose.msk.msra.mxu0 %vm107_vm0, %v49_v2  ;;  %v48_v6 = vld [vmem:[%s999_s0 + $0x68] sm:$0xff]  ;;  %v65_v7 = vld [vmem:[%s1001_s2 + $0x30] sm:$0xff]  ;;  %vm285_vm1 = vcmask 523264   ;;  %s573_s30 = sshll.u32 %s1008_s9, 4  ;;  %s574_s30 = int_to_ptr.hbm [resolvable:$true] %s573_s30 }
   0x9   :  { %v63_v8 = vld [vmem:[%s1001_s2 + $0x20] sm:$0xff]  ;;  %v46_v10 = vld [vmem:[%s999_s0 + $0x58] sm:$0xff]  ;;  %v60_v11 = vld [vmem:[%s1001_s2 + $0x8] sm:$0xff] }
   0xa   :  { %v47_v9 = vld [vmem:[%s999_s0 + $0x60] sm:$0xff]  ;;  %v45_v13 = vld [vmem:[%s999_s0 + $0x50] sm:$0xff]  ;;  %v44_v14 = vld [vmem:[%s999_s0 + $0x48] sm:$0xff] }
   0xb   :  { %v59_v12 = vld [vmem:[%s1001_s2] sm:$0xff]  ;;  %v243_v15 = vld [vmem:[%s1003_s4 + $0x30] sm:$0xff]  ;;  %v242_v16 = vld [vmem:[%s1003_s4 + $0x28] sm:$0xff] }
   0xc   :  { %624 = vmatpush.xpose.msk.msra.mxu3 %vm107_vm0, %v48_v6  ;;  %584 = vmatpush.xpose.msk.msra.mxu0 %vm107_vm0, %v48_v6  ;;  %v62_v17 = vld [vmem:[%s1001_s2 + $0x18] sm:$0xff]  ;;  %v43_v18 = vld [vmem:[%s999_s0 + $0x40] sm:$0xff]  ;;  %v61_v21 = vld [vmem:[%s1001_s2 + $0x10] sm:$0xff] }
   0xd   :  { %84 = vperm.xlu2 %642, %v62_v17   ;;  %v42_v19 = vld [vmem:[%s999_s0 + $0x38] sm:$0xff]  ;;  %v239_v22 = vld [vmem:[%s1003_s4 + $0x10] sm:$0xff]  ;;  %v40_v24 = vld [vmem:[%s999_s0 + $0x28] sm:$0xff] }
   0xe   :  { %99 = vperm.xlu0 %640, %v65_v7   ;;  %v240_v20 = vld [vmem:[%s1003_s4 + $0x18] sm:$0xff]  ;;  %v41_v23 = vld [vmem:[%s999_s0 + $0x30] sm:$0xff]  ;;  %v237_v25 = vld [vmem:[%s1003_s4] sm:$0xff] }
   0xf   :  { %89 = vperm.xlu1 %641, %v63_v8   ;;  %v244_v26 = vld [vmem:[%s1003_s4 + $0x38] sm:$0xff]  ;;  %v367_v27 = vld [vmem:[%s1005_s6] sm:$0xff]  ;;  %v369_v30 = vld [vmem:[%s1005_s6 + $0x10] sm:$0xff] }
  0x10   :  { %625 = vmatpush.xpose.msk.msra.mxu3 %vm107_vm0, %v47_v9  ;;  %585 = vmatpush.xpose.msk.msra.mxu0 %vm107_vm0, %v47_v9  ;;  %v39_v28 = vld [vmem:[%s999_s0 + $0x20] sm:$0xff]  ;;  %v38_v29 = vld [vmem:[%s999_s0 + $0x18] sm:$0xff]  ;;  %v37_v33 = vld [vmem:[%s999_s0 + $0x10] sm:$0xff] }
  0x11   :  { %v241_v31 = vld [vmem:[%s1003_s4 + $0x20] sm:$0xff]  ;;  %v370_v32 = vld [vmem:[%s1005_s6 + $0x18] sm:$0xff]  ;;  %v36_v34 = vld [vmem:[%s999_s0 + $0x8] sm:$0xff] }
  0x12   :  { %v372_v35 = vld [vmem:[%s1005_s6 + $0x28] sm:$0xff]  ;;  %v488_v37 = vld [vmem:[%s1006_s7] sm:$0xff]  ;;  %v54_v39 = vld [vmem:[%s1000_s1 + $0x18] sm:$0xff] }
  0x13   :  { %v238_v36 = vld [vmem:[%s1003_s4 + $0x8] sm:$0xff]  ;;  %v35_v38 = vld [vmem:[%s999_s0] sm:$0xff]  ;;  %v490_v41 = vld [vmem:[%s1006_s7 + $0x10] sm:$0xff] }
  0x14   :  { %626 = vmatpush.xpose.msk.msra.mxu3 %vm107_vm0, %v46_v10  ;;  %586 = vmatpush.xpose.msk.msra.mxu0 %vm107_vm0, %v46_v10  ;;  %v51_v40 = vld [vmem:[%s1000_s1] sm:$0xff]  ;;  %v368_v42 = vld [vmem:[%s1005_s6 + $0x8] sm:$0xff]  ;;  %v491_v43 = vld [vmem:[%s1006_s7 + $0x18] sm:$0xff] }
  0x15   :  { %79 = vperm.xlu2 %642, %v61_v21   ;;  %v55_v44 = vld [vmem:[%s1000_s1 + $0x20] sm:$0xff]  ;;  %v52_v45 = vld [vmem:[%s1000_s1 + $0x8] sm:$0xff]  ;;  %v374_v48 = vld [vmem:[%s1005_s6 + $0x38] sm:$0xff] }
  0x16   :  { %74 = vperm.xlu0 %640, %v60_v11   ;;  %v371_v46 = vld [vmem:[%s1005_s6 + $0x20] sm:$0xff]  ;;  %v56_v49 = vld [vmem:[%s1000_s1 + $0x28] sm:$0xff]  ;;  %v53_v50 = vld [vmem:[%s1000_s1 + $0x10] sm:$0xff] }
  0x17   :  { %69 = vperm.xlu1 %641, %v59_v12   ;;  %v492_v47 = vld [vmem:[%s1006_s7 + $0x20] sm:$0xff]  ;;  %v489_v51 = vld [vmem:[%s1006_s7 + $0x8] sm:$0xff]  ;;  %v494_v52 = vld [vmem:[%s1006_s7 + $0x30] sm:$0xff] }
  0x18   :  { %627 = vmatpush.xpose.msk.msra.mxu3 %vm107_vm0, %v45_v13  ;;  %587 = vmatpush.xpose.msk.msra.mxu0 %vm107_vm0, %v45_v13  ;;  %v495_v53 = vld [vmem:[%s1006_s7 + $0x38] sm:$0xff]  ;;  %v57_v54 = vld [vmem:[%s1000_s1 + $0x30] sm:$0xff]  ;;  %v493_v57 = vld [vmem:[%s1006_s7 + $0x28] sm:$0xff] }
  0x19   :  { %v373_v55 = vld [vmem:[%s1005_s6 + $0x30] sm:$0xff]  ;;  %v58_v56 = vld [vmem:[%s1000_s1 + $0x38] sm:$0xff]  ;;  %v557_v58 = vld [vmem:[#allocation2] sm:$0x1] }
  0x1c   :  { %628 = vmatpush.xpose.msk.msra.mxu3 %vm107_vm0, %v44_v14  ;;  %588 = vmatpush.xpose.msk.msra.mxu0 %vm107_vm0, %v44_v14 }
  0x1d   :  { %282 = vperm.xlu2 %642, %v244_v26  }
  0x1e   :  { %277 = vperm.xlu0 %640, %v243_v15  }
  0x1f   :  { %272 = vperm.xlu1 %641, %v242_v16  }
  0x20   :  { %629 = vmatpush.xpose.msk.msra.mxu3 %vm107_vm0, %v43_v18  ;;  %589 = vmatpush.xpose.msk.msra.mxu0 %vm107_vm0, %v43_v18 }
  0x24   :  { %630 = vmatpush.xpose.msk.msra.mxu3 %vm107_vm0, %v42_v19  ;;  %590 = vmatpush.xpose.msk.msra.mxu0 %vm107_vm0, %v42_v19 }
  0x25   :  { %267 = vperm.xlu2 %642, %v241_v31   ;;  %v233_v31 = vld [vmem:[%s1002_s3 + $0x20] sm:$0xff] }
  0x26   :  { %262 = vperm.xlu0 %640, %v240_v20  }
  0x27   :  { %257 = vperm.xlu1 %641, %v239_v22  }
  0x28   :  { %631 = vmatpush.xpose.msk.msra.mxu3 %vm107_vm0, %v41_v23  ;;  %591 = vmatpush.xpose.msk.msra.mxu0 %vm107_vm0, %v41_v23 }
  0x2c   :  { %632 = vmatpush.xpose.msk.msra.mxu3 %vm107_vm0, %v40_v24  ;;  %592 = vmatpush.xpose.msk.msra.mxu0 %vm107_vm0, %v40_v24 }
  0x2d   :  { %252 = vperm.xlu2 %642, %v238_v36  }
  0x2e   :  { %247 = vperm.xlu0 %640, %v237_v25  }
  0x2f   :  { %377 = vperm.xlu1 %641, %v367_v27   ;;  %v229_v27 = vld [vmem:[%s1002_s3] sm:$0xff] }
  0x30   :  { %633 = vmatpush.xpose.msk.msra.mxu3 %vm107_vm0, %v39_v28  ;;  %593 = vmatpush.xpose.msk.msra.mxu0 %vm107_vm0, %v39_v28  ;;  %v230_v28 = vld [vmem:[%s1002_s3 + $0x8] sm:$0xff] }
  0x34   :  { %634 = vmatpush.xpose.msk.msra.mxu3 %vm107_vm0, %v38_v29  ;;  %594 = vmatpush.xpose.msk.msra.mxu0 %vm107_vm0, %v38_v29  ;;  %v231_v29 = vld [vmem:[%s1002_s3 + $0x10] sm:$0xff] }
  0x35   :  { %382 = vperm.xlu2 %642, %v368_v42  }
  0x36   :  { %387 = vperm.xlu0 %640, %v369_v30   ;;  %v232_v30 = vld [vmem:[%s1002_s3 + $0x18] sm:$0xff] }
  0x37   :  { %392 = vperm.xlu1 %641, %v370_v32   ;;  %v234_v32 = vld [vmem:[%s1002_s3 + $0x28] sm:$0xff] }
  0x38   :  { %635 = vmatpush.xpose.msk.msra.mxu3 %vm107_vm0, %v37_v33  ;;  %595 = vmatpush.xpose.msk.msra.mxu0 %vm107_vm0, %v37_v33  ;;  %v235_v33 = vld [vmem:[%s1002_s3 + $0x30] sm:$0xff] }
  0x3c   :  { %636 = vmatpush.xpose.msk.msra.mxu3 %vm107_vm0, %v36_v34  ;;  %596 = vmatpush.xpose.msk.msra.mxu0 %vm107_vm0, %v36_v34  ;;  %v236_v34 = vld [vmem:[%s1002_s3 + $0x38] sm:$0xff] }
  0x3d   :  { %397 = vperm.xlu2 %642, %v371_v46  }
  0x3e   :  { %402 = vperm.xlu0 %640, %v372_v35  }
  0x3f   :  { %498 = vperm.xlu1 %641, %v488_v37  }
  0x40   :  { %637 = vmatpush.xpose.msk.msra.mxu3 %vm107_vm0, %v35_v38  ;;  %597 = vmatpush.xpose.msk.msra.mxu0 %vm107_vm0, %v35_v38 }
  0x43   :  { %601 = vmatmul.msk.f32.vlgmr.msra.gmra.mxu3 %vm107_vm0, %v54_v39  ;;  %598 = vmatmul.msk.f32.vlgmr.msra.gmra.mxu0 %vm107_vm0, %v51_v40 }
  0x45   :  { %503 = vperm.xlu2 %642, %v489_v51  }
  0x46   :  { %508 = vperm.xlu0 %640, %v490_v41  }
  0x47   :  { %513 = vperm.xlu1 %641, %v491_v43  }
  0x4b   :  { %602 = vmatmul.msk.f32.gmra.mxu3 %vm107_vm0, %v55_v44  ;;  %599 = vmatmul.msk.f32.gmra.mxu0 %vm107_vm0, %v52_v45 }
  0x4d   :  { %407 = vperm.xlu2 %642, %v373_v55  }
  0x4e   :  { %518 = vperm.xlu0 %640, %v492_v47  }
  0x4f   :  { %412 = vperm.xlu1 %641, %v374_v48  }
  0x53   :  { %603 = vmatmul.msk.f32.gmra.mxu3 %vm107_vm0, %v56_v49  ;;  %600 = vmatmul.msk.f32.gmra.mxu0 %vm107_vm0, %v53_v50 }
  0x55   :  { %523 = vperm.xlu2 %642, %v493_v57  }
  0x56   :  { %528 = vperm.xlu0 %640, %v494_v52  }
  0x57   :  { %533 = vperm.xlu1 %641, %v495_v53  }
  0x5b   :  { %604 = vmatmul.msk.f32.gmra.mxu3 %vm107_vm0, %v57_v54 }
  0x5d   :  { %560 = vperm.xlu2 %642, %v557_v58  }
  0x63   :  { %605 = vmatmul.msk.f32.gmra.mxu3 %vm107_vm0, %v58_v56 }
  0x67   :  { %v85_v3 = vpop.permute.xlu2 %84 }
  0x6f   :  { %v80_v16 = vpop.permute.xlu2 %79 }
  0x77   :  { %v283_v41 = vpop.permute.xlu2 %282 }
  0x78   :  { %v105_v63 = vpop.permute.xlu0 %104 }
  0x79   :  { %v95_v0 = vpop.permute.xlu1 %94 }
  0x7f   :  { %v268_v45 = vpop.permute.xlu2 %267 }
  0x80   :  { %v100_v4 = vpop.permute.xlu0 %99 }
  0x81   :  { %v90_v8 = vpop.permute.xlu1 %89 }
  0x88   :  { %v75_v19 = vpop.permute.xlu0 %74 }
  0x89   :  { %v70_v22 = vpop.permute.xlu1 %69 }
  0x90   :  { %v278_v42 = vpop.permute.xlu0 %277 }
  0x91   :  { %v273_v44 = vpop.permute.xlu1 %272 }
  0x98   :  { %v263_v49 = vpop.permute.xlu0 %262 }
  0x99   :  { %v258_v56 = vpop.permute.xlu1 %257 }
  0xc0   :  { %v197_v62 = vpop.f32.mrf.mxu0 }
  0xc1   :  { %v198_v23 = vadd.f32 %v197_v62, %v70_v22  ;;  %v248_v62 = vpop.permute.xlu0 %247 }
  0xc3   :  { %v221_v26 = vmax.f32 %v198_v23, 0.0 }
  0xc6   :  { %v206_v59 = vpop.f32.mrf.mxu3 }
  0xc7   :  { %v207_v14 = vadd.f32 %v206_v59, %v85_v3  ;;  %v253_v59 = vpop.permute.xlu2 %252  ;;  %v359_v3 = vld [vmem:[%s1004_s5] sm:$0xff] }
  0xc8   :  { %v200_v2 = vpop.f32.mrf.mxu0 }
  0xc9   :  { %v224_v20 = vmax.f32 %v207_v14, 0.0  ;;  %v201_v21 = vadd.f32 %v200_v2, %v75_v19 }
  0xcb   :  { %v222_v25 = vmax.f32 %v201_v21, 0.0 }
  0xce   :  { %v209_v60 = vpop.f32.mrf.mxu3 }
  0xcf   :  { %v210_v11 = vadd.f32 %v209_v60, %v90_v8  ;;  %v364_v8 = vld [vmem:[%s1004_s5 + $0x28] sm:$0xff]  ;;  %v383_v14 = vpop.permute.xlu2 %382 }
  0xd0   :  { %v203_v13 = vpop.f32.mrf.mxu0 }
  0xd1   :  { %v225_v17 = vmax.f32 %v210_v11, 0.0  ;;  %v204_v18 = vadd.f32 %v203_v13, %v80_v16  ;;  %v378_v13 = vpop.permute.xlu1 %377 }
  0xd3   :  { %v223_v24 = vmax.f32 %v204_v18, 0.0 }
  0xd6   :  { %v212_v61 = vpop.f32.mrf.mxu3 }
  0xd7   :  { %v213_v9 = vadd.f32 %v212_v61, %v95_v0  ;;  %v398_v18 = vpop.permute.xlu2 %397 }
  0xd9   :  { %v226_v15 = vmax.f32 %v213_v9, 0.0  ;;  %v365_v9 = vld [vmem:[%s1004_s5 + $0x30] sm:$0xff] }
  0xde   :  { %v215_v1 = vpop.f32.mrf.mxu3 }
  0xdf   :  { %v216_v6 = vadd.f32 %v215_v1, %v100_v4  ;;  %v360_v4 = vld [vmem:[%s1004_s5 + $0x8] sm:$0xff]  ;;  %v504_v23 = vpop.permute.xlu2 %503 }
  0xe1   :  { %v227_v12 = vmax.f32 %v216_v6, 0.0  ;;  %v362_v6 = vld [vmem:[%s1004_s5 + $0x18] sm:$0xff] }
  0xe6   :  { %v218_v5 = vpop.f32.mrf.mxu3 }
  0xe7   :  { %v219_v7 = vadd.f32 %v218_v5, %v105_v63  ;;  %v361_v5 = vld [vmem:[%s1004_s5 + $0x10] sm:$0xff] }
  0xe9   :  { %v228_v10 = vmax.f32 %v219_v7, 0.0  ;;  %v363_v7 = vld [vmem:[%s1004_s5 + $0x20] sm:$0xff] }
  0xeb   :  { %318 = vmatpush.msra.mxu1 %v228_v10  ;;  %v366_v10 = vld [vmem:[%s1004_s5 + $0x38] sm:$0xff]  ;;  %s670_s5 = smov [#allocation3]  }
  0xec   :  { %s571_s27 = sshll.u32 %s670_s5, 4  ;;  %s572_s27 = int_to_ptr.vmem [resolvable:$true] %s571_s27 }
  0xed   :  { %319 = vmatpush.msra.mxu1 %v227_v12 }
  0xef   :  { %320 = vmatpush.msra.mxu1 %v226_v15  ;;  %v388_v15 = vpop.permute.xlu0 %387 }
  0xf1   :  { %321 = vmatpush.msra.mxu1 %v225_v17  ;;  %v393_v17 = vpop.permute.xlu1 %392 }
  0xf3   :  { %322 = vmatpush.msra.mxu1 %v224_v20 }
  0xf5   :  { %323 = vmatpush.msra.mxu1 %v223_v24 }
  0xf7   :  { %324 = vmatpush.msra.mxu1 %v222_v25  ;;  %v403_v20 = vpop.permute.xlu0 %402 }
  0xf9   :  { %325 = vmatpush.msra.mxu1 %v221_v26  ;;  %v499_v21 = vpop.permute.xlu1 %498 }
  0xfa   :  { %606 = vmatmul.msk.f32.vlgmr.msra.gmra.mxu1 %vm285_vm1, %v229_v27 }
  0xff   :  { %v509_v24 = vpop.permute.xlu0 %508 }
 0x101   :  { %v514_v26 = vpop.permute.xlu1 %513 }
 0x102   :  { %607 = vmatmul.msk.f32.gmra.mxu1 %vm285_vm1, %v230_v28 }
 0x10a   :  { %608 = vmatmul.msk.f32.gmra.mxu1 %vm285_vm1, %v231_v29 }
 0x112   :  { %609 = vmatmul.msk.f32.gmra.mxu1 %vm285_vm1, %v232_v30 }
 0x11a   :  { %610 = vmatmul.msk.f32.gmra.mxu1 %vm285_vm1, %v233_v31 }
 0x122   :  { %611 = vmatmul.msk.f32.gmra.mxu1 %vm285_vm1, %v234_v32  ;;  %v408_v32 = vpop.permute.xlu2 %407 }
 0x12a   :  { %612 = vmatmul.msk.f32.gmra.mxu1 %vm285_vm1, %v235_v33 }
 0x132   :  { %613 = vmatmul.msk.f32.gmra.mxu1 %vm285_vm1, %v236_v34 }
 0x177   :  { %v327_v35 = vpop.f32.mrf.mxu1 }
 0x178   :  { %v328_v63 = vadd.f32 %v327_v35, %v248_v62 }
 0x17a   :  { %v351_v2 = vmax.f32 %v328_v63, 0.0 }
 0x17f   :  { %v330_v36 = vpop.f32.mrf.mxu1 }
 0x180   :  { %v331_v60 = vadd.f32 %v330_v36, %v253_v59  ;;  %v519_v36 = vpop.permute.xlu0 %518 }
 0x182   :  { %v352_v1 = vmax.f32 %v331_v60, 0.0 }
 0x187   :  { %v333_v37 = vpop.f32.mrf.mxu1 }
 0x188   :  { %v334_v57 = vadd.f32 %v333_v37, %v258_v56 }
 0x18a   :  { %v353_v0 = vmax.f32 %v334_v57, 0.0 }
 0x18f   :  { %v336_v38 = vpop.f32.mrf.mxu1 }
 0x190   :  { %v337_v54 = vadd.f32 %v336_v38, %v263_v49 }
 0x192   :  { %v354_v61 = vmax.f32 %v337_v54, 0.0 }
 0x197   :  { %v339_v39 = vpop.f32.mrf.mxu1 }
 0x198   :  { %v340_v52 = vadd.f32 %v339_v39, %v268_v45  ;;  %v413_v45 = vpop.permute.xlu1 %412 }
 0x19a   :  { %v355_v58 = vmax.f32 %v340_v52, 0.0  ;;  %v524_v52 = vpop.permute.xlu2 %523 }
 0x19f   :  { %v342_v40 = vpop.f32.mrf.mxu1 }
 0x1a0   :  { %v343_v50 = vadd.f32 %v342_v40, %v273_v44  ;;  %v534_v62 = vpop.permute.xlu1 %533 }
 0x1a2   :  { %v356_v55 = vmax.f32 %v343_v50, 0.0 }
 0x1a7   :  { %v345_v43 = vpop.f32.mrf.mxu1 }
 0x1a8   :  { %v346_v47 = vadd.f32 %v345_v43, %v278_v42 }
 0x1aa   :  { %v357_v53 = vmax.f32 %v346_v47, 0.0 }
 0x1af   :  { %v348_v46 = vpop.f32.mrf.mxu1 }
 0x1b0   :  { %v349_v48 = vadd.f32 %v348_v46, %v283_v41 }
 0x1b2   :  { %v358_v51 = vmax.f32 %v349_v48, 0.0 }
 0x1b4   :  { %447 = vmatpush.msra.mxu2 %v358_v51 }
 0x1b6   :  { %448 = vmatpush.msra.mxu2 %v357_v53 }
 0x1b8   :  { %449 = vmatpush.msra.mxu2 %v356_v55  ;;  %v529_v55 = vpop.permute.xlu0 %528 }
 0x1ba   :  { %450 = vmatpush.msra.mxu2 %v355_v58 }
 0x1bc   :  { %451 = vmatpush.msra.mxu2 %v354_v61 }
 0x1be   :  { %452 = vmatpush.msra.mxu2 %v353_v0 }
 0x1c0   :  { %453 = vmatpush.msra.mxu2 %v352_v1 }
 0x1c2   :  { %454 = vmatpush.msra.mxu2 %v351_v2 }
 0x1c3   :  { %614 = vmatmul.msk.f32.vlgmr.msra.gmra.mxu2 %vm285_vm1, %v359_v3 }
 0x1cb   :  { %615 = vmatmul.msk.f32.gmra.mxu2 %vm285_vm1, %v360_v4 }
 0x1d3   :  { %616 = vmatmul.msk.f32.gmra.mxu2 %vm285_vm1, %v361_v5 }
 0x1db   :  { %617 = vmatmul.msk.f32.gmra.mxu2 %vm285_vm1, %v362_v6  ;;  %v561_v6 = vpop.permute.xlu2 %560 }
 0x1e3   :  { %618 = vmatmul.msk.f32.gmra.mxu2 %vm285_vm1, %v363_v7 }
 0x1eb   :  { %619 = vmatmul.msk.f32.gmra.mxu2 %vm285_vm1, %v364_v8  ;;  %v563_v8 = vperm.slane %v561_v6, 0 }
 0x1f3   :  { %620 = vmatmul.msk.f32.gmra.mxu2 %vm285_vm1, %v365_v9 }
 0x1fb   :  { %621 = vmatmul.msk.f32.gmra.mxu2 %vm285_vm1, %v366_v10 }
 0x246   :  { %v456_v11 = vpop.f32.mrf.mxu2 }
 0x247   :  { %v457_v28 = vadd.f32 %v456_v11, %v378_v13 }
 0x249   :  { %v480_v33 = vmax.f32 %v457_v28, 0.0 }
 0x24b   :  { %v536_v41 = vmul.f32 %v499_v21, %v480_v33 }
 0x24e   :  { %v459_v12 = vpop.f32.mrf.mxu2 }
 0x24f   :  { %v460_v25 = vadd.f32 %v459_v12, %v383_v14 }
 0x251   :  { %v481_v30 = vmax.f32 %v460_v25, 0.0 }
 0x253   :  { %v537_v37 = vmul.f32 %v504_v23, %v481_v30 }
 0x255   :  { %v544_v46 = vadd.f32 %v537_v37, %v536_v41 }
 0x256   :  { %v462_v16 = vpop.f32.mrf.mxu2 }
 0x257   :  { %v463_v29 = vadd.f32 %v462_v16, %v388_v15 }
 0x259   :  { %v482_v34 = vmax.f32 %v463_v29, 0.0 }
 0x25b   :  { %v538_v42 = vmul.f32 %v509_v24, %v482_v34 }
 0x25d   :  { %v545_v49 = vadd.f32 %v544_v46, %v538_v42 }
 0x25e   :  { %v465_v19 = vpop.f32.mrf.mxu2 }
 0x25f   :  { %v466_v31 = vadd.f32 %v465_v19, %v393_v17 }
 0x261   :  { %v483_v38 = vmax.f32 %v466_v31, 0.0 }
 0x263   :  { %v539_v47 = vmul.f32 %v514_v26, %v483_v38 }
 0x265   :  { %v546_v53 = vadd.f32 %v545_v49, %v539_v47 }
 0x266   :  { %v468_v22 = vpop.f32.mrf.mxu2 }
 0x267   :  { %v469_v35 = vadd.f32 %v468_v22, %v398_v18 }
 0x269   :  { %v484_v43 = vmax.f32 %v469_v35, 0.0 }
 0x26b   :  { %v540_v50 = vmul.f32 %v519_v36, %v484_v43 }
 0x26d   :  { %v547_v57 = vadd.f32 %v546_v53, %v540_v50 }
 0x26e   :  { %v471_v27 = vpop.f32.mrf.mxu2 }
 0x26f   :  { %v472_v39 = vadd.f32 %v471_v27, %v403_v20 }
 0x271   :  { %v485_v48 = vmax.f32 %v472_v39, 0.0 }
 0x273   :  { %v541_v54 = vmul.f32 %v524_v52, %v485_v48 }
 0x275   :  { %v548_v60 = vadd.f32 %v547_v57, %v541_v54 }
 0x276   :  { %v474_v40 = vpop.f32.mrf.mxu2 }
 0x277   :  { %v475_v44 = vadd.f32 %v474_v40, %v408_v32 }
 0x279   :  { %v486_v51 = vmax.f32 %v475_v44, 0.0 }
 0x27b   :  { %v542_v58 = vmul.f32 %v529_v55, %v486_v51 }
 0x27d   :  { %v549_v63 = vadd.f32 %v548_v60, %v542_v58 }
 0x27e   :  { %v477_v56 = vpop.f32.mrf.mxu2 }
 0x27f   :  { %v478_v59 = vadd.f32 %v477_v56, %v413_v45 }
 0x281   :  { %v487_v61 = vmax.f32 %v478_v59, 0.0 }
 0x283   :  { %v543_v0 = vmul.f32 %v534_v62, %v487_v61 }
 0x285   :  { %v550_v1 = vadd.f32 %v549_v63, %v543_v0 }
 0x287   :  { %v551_v2 = vrot.slane %v550_v1, 4 }
 0x289   :  { %v552_v3 = vadd.f32 %v551_v2, %v550_v1 }
 0x28b   :  { %v553_v4 = vrot.slane %v552_v3, 2 }
 0x28d   :  { %v554_v5 = vadd.f32 %v553_v4, %v552_v3 }
 0x28f   :  { %v555_v7 = vrot.slane %v554_v5, 1 }
 0x291   :  { %v556_v9 = vadd.f32 %v555_v7, %v554_v5 }
 0x293   :  { %v564_v10 = vadd.f32 %v563_v8, %v556_v9 }
 0x295   :  { %565 = vst [vmem:[#allocation3] sm:$0x1] %v564_v10 }
 0x296   :  { %576 = dma.vmem_to_hbm [thread:$0]  %s572_s27, 16, %s574_s30, [#allocation4]  }
 0x297   :  { %667 = dma.done.wait [#allocation4], 16  }
 0x298   :  { %668 = vsyncadd [#allocation4], 4294967280 }
 0x299   :  { %581 = vsyncpa [#allocation4], 1 }

</bundles_post_ra>
